<compile_context>
chip_gen: v7x
topology: tpu7x:2x2x1
jax: 0.10.0
libtpu: 0.0.40
codegen_flags: <defaults>
</compile_context>

<pallas_src>
import jax
import jax.numpy as jnp
from jax.experimental import pallas as pl
from jax.experimental.pallas import tpu as pltpu


def _affine_kernel(x_ref, w_ref, b_ref, o_ref):
    # x_ref / o_ref: (br, lane_width) lane-dense f32 tiles in VMEM.
    # w_ref / b_ref: (1,) scalars in SMEM.
    o_ref[...] = x_ref[...] * w_ref[0] + b_ref[0]


def linear_1x1(x, weight, bias, *, block_rows=2048, lane_width=512,
               min_pallas_elems=1 << 15):
    """y = x @ weight.T + bias for nn.Linear(1, 1)  (== x * w + b).

    x:      (..., 1) float32 (any leading batch shape)
    weight: (1, 1)   float32 (PyTorch layout: (out_features, in_features))
    bias:   (1,)     float32
    returns same shape as x.
    """
    orig_shape = x.shape
    dtype = x.dtype
    w_s = weight.reshape(1).astype(dtype)
    b_s = bias.reshape(1).astype(dtype)

    flat = x.reshape(-1)
    total = flat.shape[0]

    # Tiny-input fast path: plain-JAX FMA. Padding 8 elements to a 4 KiB tile and
    # launching Pallas costs far more than the op; XLA fuses this for free.
    if total == 0 or total < min_pallas_elems:
        return (x * w_s[0] + b_s[0]).astype(dtype)

    # Lane-dense 2-D slab. Common case (total % lane_width == 0): zero-copy reshape,
    # no pad in, no slice out. Ragged case: pad to a whole number of lane rows.
    if total % lane_width == 0:
        rows = total // lane_width
        x2d = flat.reshape(rows, lane_width)
        padded = False
    else:
        rows = pl.cdiv(total, lane_width)
        pad = rows * lane_width - total
        x2d = jnp.pad(flat, (0, pad)).reshape(rows, lane_width)
        padded = True

    # Row-block sizing:
    #  - rows <= 8: single full-extent block (full-dim block shapes are legal even
    #    when not a multiple of 8).
    #  - rows  > 8: at least 2 blocks (multiple-of-8 rows) so a dual-TC chip (v7x)
    #    can stream both; cap at block_rows (4 MiB f32 tiles at lane_width=512).
    min_rows = 8  # f32 sublane granularity
    if rows <= min_rows:
        br = rows
    else:
        half = max(min_rows, ((rows // 2) // min_rows) * min_rows)
        br = min(block_rows, half)
    grid = (pl.cdiv(rows, br),)

    out2d = pl.pallas_call(
        _affine_kernel,
        out_shape=jax.ShapeDtypeStruct((rows, lane_width), dtype),
        grid=grid,
        in_specs=[
            pl.BlockSpec((br, lane_width), lambda i: (i, 0)),
            pl.BlockSpec(memory_space=pltpu.MemorySpace.SMEM),
            pl.BlockSpec(memory_space=pltpu.MemorySpace.SMEM),
        ],
        out_specs=pl.BlockSpec((br, lane_width), lambda i: (i, 0)),
        compiler_params=pltpu.CompilerParams(
            dimension_semantics=("parallel",),   # lets v7x shard blocks over both TCs
            vmem_limit_bytes=48 << 20,           # 4 MiB tiles x 2 arrays x 2 buffers
        ),
    )(x2d, w_s, b_s)

    if padded:
        # Ragged fallback only: drop the zero-padding.
        return out2d.reshape(-1)[:total].reshape(orig_shape)
    return out2d.reshape(orig_shape)


if __name__ == "__main__":
    key = jax.random.PRNGKey(0)
    kx1, kx2, kx3, kw, kb = jax.random.split(key, 5)

    # nn.Linear(1, 1)-shaped parameters.
    weight = jax.random.uniform(kw, (1, 1), jnp.float32, minval=-1.0, maxval=1.0)
    bias = jax.random.uniform(kb, (1,), jnp.float32, minval=-1.0, maxval=1.0)

    # 1) Pallas kernel, aligned zero-copy path: N = 4096 (= 8 * 512 lanes).
    x1 = jax.random.normal(kx1, (4096, 1), jnp.float32)
    y1 = jax.block_until_ready(linear_1x1(x1, weight, bias, min_pallas_elems=0))
    assert y1.shape == x1.shape
    assert jnp.allclose(y1, x1 @ weight.T + bias, atol=1e-6), "aligned path mismatch"

    # 2) Pallas kernel, ragged fallback path (pad + slice, >= 2 grid blocks): N = 5000.
    x2 = jax.random.normal(kx2, (5000, 1), jnp.float32)
    y2 = jax.block_until_ready(linear_1x1(x2, weight, bias, min_pallas_elems=0))
    assert y2.shape == x2.shape
    assert jnp.allclose(y2, x2 @ weight.T + bias, atol=1e-6), "ragged path mismatch"

    # 3) Tiny input (typical RegressionModel batch): plain-JAX fast path.
    x3 = jax.random.normal(kx3, (8, 1), jnp.float32)
    y3 = jax.block_until_ready(linear_1x1(x3, weight, bias))
    assert y3.shape == x3.shape
    assert jnp.allclose(y3, x3 @ weight.T + bias, atol=1e-6), "fast path mismatch"

    print("KERNEL_OK")
</pallas_src>

<mosaic_0001>
module attributes {stable_mosaic.version = 11 : i64} {
  func.func @_affine_kernel(%arg0: i32, %arg1: memref<8x512xf32, #tpu.memory_space<vmem>>, %arg2: memref<1xf32, #tpu.memory_space<smem>>, %arg3: memref<1xf32, #tpu.memory_space<smem>>, %arg4: memref<8x512xf32, #tpu.memory_space<vmem>>) attributes {dimension_semantics = [#tpu.dimension_semantics<parallel>], iteration_bounds = array<i64: 1>, scalar_prefetch = 0 : i64, scratch_operands = 0 : i64, tpu.core_type = #tpu.core_type<tc>, window_params = [{transform_indices = @transform_0, window_bounds = array<i64: 8, 512>}, {transform_indices = @transform_1, window_bounds = array<i64: 1>}, {transform_indices = @transform_2, window_bounds = array<i64: 1>}, {transform_indices = @transform_3, window_bounds = array<i64: 8, 512>}]} {
    %c0 = arith.constant 0 : index
    %c0_0 = arith.constant 0 : index
    %0 = vector.load %arg1[%c0, %c0_0] : memref<8x512xf32, #tpu.memory_space<vmem>>, vector<8x512xf32>
    %c0_1 = arith.constant 0 : index
    %1 = memref.load %arg2[%c0_1] : memref<1xf32, #tpu.memory_space<smem>>
    %2 = vector.broadcast %1 : f32 to vector<8x512xf32>
    %3 = arith.mulf %0, %2 : vector<8x512xf32>
    %c0_2 = arith.constant 0 : index
    %4 = memref.load %arg3[%c0_2] : memref<1xf32, #tpu.memory_space<smem>>
    %5 = vector.broadcast %4 : f32 to vector<8x512xf32>
    %6 = arith.addf %3, %5 : vector<8x512xf32>
    %c0_3 = arith.constant 0 : index
    %c0_4 = arith.constant 0 : index
    %7 = vector.load %arg4[%c0_3, %c0_4] : memref<8x512xf32, #tpu.memory_space<vmem>>, vector<8x512xf32>
    tpu.vector_store %arg4[%c0_3, %c0_4], %6 {strides = array<i32>} : memref<8x512xf32, #tpu.memory_space<vmem>>, vector<8x512xf32>,
    return
  }
  func.func @transform_0(%arg0: i32) -> (i32, i32) {
    %c0_i32 = arith.constant 0 : i32
    %c0_i32_0 = arith.constant 0 : i32
    return %arg0, %c0_i32 : i32, i32
  }
  func.func @transform_1(%arg0: i32) -> i32 {
    %c0_i32 = arith.constant 0 : i32
    %c0_i32_0 = arith.constant 0 : i32
    return %c0_i32 : i32
  }
  func.func @transform_2(%arg0: i32) -> i32 {
    %c0_i32 = arith.constant 0 : i32
    %c0_i32_0 = arith.constant 0 : i32
    return %c0_i32 : i32
  }
  func.func @transform_3(%arg0: i32) -> (i32, i32) {
    %c0_i32 = arith.constant 0 : i32
    %c0_i32_0 = arith.constant 0 : i32
    return %arg0, %c0_i32 : i32, i32
  }
}

</mosaic_0001>

<bundles_post_ra>
// kernel: tpu_custom_call.1
= control target key start
LH: loop header
LB: loop body
LE: loop exit
PB: predicated region body
PF: predicated region fallthrough
CT: control target
= control target key end

     0   :  { %10 = vsyncpa [#allocation5], 0  ;;  %s166_s0 = inlined_call_operand.hbm [shape: f32[8,512], index: 0, kind: input, shape index: {}]   ;;  %s167_s1 = inlined_call_operand.<no memory space> [shape: f32[1], index: 1, kind: input, shape index: {}]   ;;  %s168_s2 = inlined_call_operand.<no memory space> [shape: f32[1], index: 2, kind: input, shape index: {}]   ;;  %s169_s3 = inlined_call_operand.hbm [shape: f32[8,512], index: 3, kind: output, shape index: {}]  }
   0x1   :  { %11 = vsyncpa [#allocation6], 0  ;;  %s114_s12 = smov [#allocation4]   ;;  %s66_s16 = scalar_lea.hbm %s166_s0, 512 }
   0x2   :  { %s18_s13 = sshll.u32 %s114_s12, 4  ;;  %p67_p0 = scmp.ne.s32.totalorder %s166_s0, %s66_s16  ;;  %s19_s13 = int_to_ptr.vmem [resolvable:$true] %s18_s13 }
   0x3   :  { %p70_p1 = scmp.lt.u32.totalorder %s66_s16, %s166_s0 }
   0x5   :  { %p72_p2 = pnand %p70_p1, %p67_p0 }
   0x7   :  { %75 = shalt.err (!%p72_p2)
}
   0x8   :  { %s76_s21 = scalar_lea.vmem %s19_s13, 512  ;;  %p81_p4 = scmp.lt.s32.totalorder %s19_s13, %s19_s13 }
   0x9   :  { %p77_p3 = scmp.ne.s32.totalorder %s19_s13, %s76_s21  ;;  %p82_p5 = scmp.lt.s32.totalorder %s76_s21, %s76_s21 }
   0xb   :  { %p83_p6 = por %p82_p5, %p81_p4 }
   0xd   :  { %p84_p7 = pnand %p83_p6, %p77_p3 }
   0xf   :  { %87 = shalt.err (!%p84_p7)
}
  0x10   :  { %21 = dma.hbm_to_vmem [thread:$0]  %s166_s0, 512, %s19_s13, [#allocation5]  }
  0x11   :  { %110 = dma.done.wait [#allocation5], 512  }
  0x12   :  { %111 = vsyncadd [#allocation5], 4294966784  ;;  %v34_v0 = vstv %s167_s1  ;;  %v29_v1 = vld [vmem:[#allocation4] sm:$0xff]  ;;  %v40_v2 = vstv %s168_s2  ;;  %v30_v3 = vld [vmem:[#allocation4 + $0x8] sm:$0xff]  ;;  %s115_s28 = smov [#allocation7]  }
  0x13   :  { %v31_v4 = vld [vmem:[#allocation4 + $0x10] sm:$0xff]  ;;  %v35_v5 = vmul.f32 %v34_v0, %v29_v1  ;;  %v36_v6 = vmul.f32 %v34_v0, %v30_v3  ;;  %v32_v8 = vld [vmem:[#allocation4 + $0x18] sm:$0xff]  ;;  %s55_s29 = sshll.u32 %s115_s28, 4  ;;  %s56_s29 = int_to_ptr.vmem [resolvable:$true] %s55_s29 }
  0x14   :  { %v37_v7 = vmul.f32 %v34_v0, %v31_v4  ;;  %v38_v9 = vmul.f32 %v34_v0, %v32_v8  ;;  %s88_s0 = scalar_lea.vmem %s56_s29, 512  ;;  %p93_p9 = scmp.lt.s32.totalorder %s56_s29, %s56_s29 }
  0x15   :  { %v41_v10 = vadd.f32 %v40_v2, %v35_v5  ;;  %v42_v11 = vadd.f32 %v40_v2, %v36_v6  ;;  %p89_p8 = scmp.ne.s32.totalorder %s56_s29, %s88_s0  ;;  %p94_p10 = scmp.lt.s32.totalorder %s88_s0, %s88_s0 }
  0x16   :  { %v43_v12 = vadd.f32 %v40_v2, %v37_v7  ;;  %v44_v13 = vadd.f32 %v40_v2, %v38_v9 }
  0x17   :  { %45 = vst [vmem:[#allocation7] sm:$0xff] %v41_v10  ;;  %46 = vst [vmem:[#allocation7 + $0x8] sm:$0xff] %v42_v11  ;;  %p95_p11 = por %p94_p10, %p93_p9 }
  0x18   :  { %47 = vst [vmem:[#allocation7 + $0x10] sm:$0xff] %v43_v12  ;;  %48 = vst [vmem:[#allocation7 + $0x18] sm:$0xff] %v44_v13 }
  0x19   :  { %p96_p12 = pnand %p95_p11, %p89_p8 }
  0x1b   :  { %99 = shalt.err (!%p96_p12)
}
  0x1c   :  { %s100_s30 = scalar_lea.hbm %s169_s3, 512 }
  0x1d   :  { %p101_p13 = scmp.ne.s32.totalorder %s169_s3, %s100_s30  ;;  %p104_p0 = scmp.lt.u32.totalorder %s100_s30, %s169_s3 }
  0x1f   :  { %p106_p1 = pnand %p104_p0, %p101_p13 }
  0x21   :  { %109 = shalt.err (!%p106_p1)
}
  0x22   :  { %58 = dma.vmem_to_hbm [thread:$0]  %s56_s29, 512, %s169_s3, [#allocation6]  }
  0x23   :  { %112 = dma.done.wait [#allocation6], 512  }
  0x24   :  { %113 = vsyncadd [#allocation6], 4294966784 }
  0x25   :  { %62 = vsyncpa [#allocation5], 1 }
  0x26   :  { %63 = vsyncpa [#allocation6], 1 }

</bundles_post_ra>
